<compile_context>
chip_gen: v7x
topology: tpu7x:2x2x1
jax: 0.10.0
libtpu: 0.0.40
codegen_flags: <defaults>
</compile_context>

<pallas_src>
import functools
import math

import jax
import jax.numpy as jnp
from jax.experimental import pallas as pl
from jax.experimental.pallas import tpu as pltpu


def _layer_norm(x, gamma, beta, eps=1e-6):
    """Single-pass LayerNorm (var = E[x^2] - E[x]^2); rsqrt lands on the EUP."""
    mu = jnp.mean(x, axis=-1, keepdims=True)
    ms = jnp.mean(x * x, axis=-1, keepdims=True)
    return (x - mu) * jax.lax.rsqrt(ms - mu * mu + eps) * gamma + beta


def _const_spec(shape):
    """Constant-index block (weights / params): single-buffered — the block never
    changes across the grid, so default double-buffering only duplicates VMEM."""
    return pl.BlockSpec(shape, lambda *_: (0,) * len(shape),
                        pipeline_mode=pl.Buffered(buffer_count=1))


# -----------------------------------------------------------------------------
# Kernel 1 (one-shot, batch-invariant, token-tiled): mask-token half of decoder.
#   y_mask     = LN(mask_token + pos)                      [TN, Ed] per tile
#   mean_mask  = mean over all N tokens (accumulated in the output block)
#   head_mask  = bf16(y_mask) @ bf16(W_head) + b_head       [TN, OUT_pad]
# -----------------------------------------------------------------------------
def _mask_half_kernel(n_tokens, pos_ref, mtok_ref, dg_ref, db_ref,
                      w_head_ref, b_head_ref, mean_out_ref, head_out_ref):
    t = pl.program_id(0)

    @pl.when(t == 0)
    def _():
        mean_out_ref[...] = jnp.zeros_like(mean_out_ref)

    y = _layer_norm(mtok_ref[...] + pos_ref[...], dg_ref[...], db_ref[...])
    mean_out_ref[...] += jnp.sum(y, axis=0, keepdims=True)
    head_out_ref[...] = (
        jnp.dot(y.astype(jnp.bfloat16), w_head_ref[...],
                preferred_element_type=jnp.float32) + b_head_ref[...])

    @pl.when(t == pl.num_programs(0) - 1)
    def _():
        mean_out_ref[...] = mean_out_ref[...] * (1.0 / n_tokens)


# -----------------------------------------------------------------------------
# Kernel 2 (grid (B, N/TN)): fused encoder + encoder_to_decoder + decoder (vis).
# Uses the identity (y + ctx) @ W + b == (y @ W + b) + ctx @ W, so per batch only
# the visible half is processed and only a [1, OUT_pad] ctx head leaves the chip.
# -----------------------------------------------------------------------------
def _mae_fused_kernel(n_tokens, patches_ref, keep_ref, w_pe_ref, b_pe_ref,
                      g_ref, beta_ref, w_e2d_ref, pos_ref, dg_ref, db_ref,
                      w_head_ref, mean_mask_ref, ctx_head_ref, sum_vis_ref):
    t = pl.program_id(1)

    @pl.when(t == 0)
    def _():
        sum_vis_ref[...] = jnp.zeros_like(sum_vis_ref)

    # ---- stand-in encoder: patch embed (bf16 MXU inputs, f32 acc) + LayerNorm
    emb = jnp.dot(patches_ref[...], w_pe_ref[...],
                  preferred_element_type=jnp.float32) + b_pe_ref[...]     # [TN, Ee]
    emb = _layer_norm(emb, g_ref[...], beta_ref[...])
    x_vis = (emb * keep_ref[...]).astype(jnp.bfloat16)   # zero masked tokens + bf16 cast

    # ---- encoder_to_decoder: Linear(bias=False), bf16 MXU inputs, f32 acc
    xd = jnp.dot(x_vis, w_e2d_ref[...], preferred_element_type=jnp.float32)  # [TN, Ed]

    # ---- decoder stand-in, visible half only: LN + token-mean accumulation
    y_vis = _layer_norm(xd + pos_ref[...], dg_ref[...], db_ref[...])
    sum_vis_ref[...] += jnp.sum(y_vis, axis=0, keepdims=True)

    @pl.when(t == pl.num_programs(1) - 1)
    def _():
        mean_vis = sum_vis_ref[...] * (1.0 / n_tokens)
        ctx = 0.5 * (mean_vis + mean_mask_ref[...])       # mean over all 2N tokens
        ctx_head_ref[...] = jnp.dot(ctx.astype(jnp.bfloat16), w_head_ref[...],
                                    preferred_element_type=jnp.float32)   # [1, OUT_pad]


# -----------------------------------------------------------------------------
# Kernel 3 (epilogue, grid (B, N/TN), fully parallel): broadcast-add the
# batch-invariant head_mask (b_head already folded in) with the per-batch ctx head.
# -----------------------------------------------------------------------------
def _epilogue_kernel(head_mask_ref, ctx_head_ref, out_ref):
    out_ref[...] = head_mask_ref[...] + ctx_head_ref[...]


# -----------------------------------------------------------------------------
# Wrapper
# -----------------------------------------------------------------------------
def get_sinusoid_encoding_table(n_position, d_hid):
    """Sinusoid table, matching the PyTorch helper. Returns [n_position, d_hid]."""
    positions = jnp.arange(n_position, dtype=jnp.float32)[:, None]
    dim_i = jnp.arange(d_hid, dtype=jnp.float32)[None, :]
    angle = positions / jnp.power(10000.0, 2.0 * jnp.floor(dim_i / 2.0) / d_hid)
    even = (jnp.arange(d_hid) % 2 == 0)[None, :]
    return jnp.where(even, jnp.sin(angle), jnp.cos(angle)).astype(jnp.float32)


def mae_forward(x, mask, params, patch_size, tn=None):
    B, C, H, W = x.shape
    P = patch_size
    gh, gw = H // P, W // P
    N = gh * gw
    PD = C * P * P
    Ee = params["w_patch"].shape[1]
    Ed = params["w_e2d"].shape[1]
    OUT = params["w_head"].shape[1]
    OUT_pad = ((OUT + 127) // 128) * 128     # lane-dense output slab

    if tn is None:
        # largest token tile <=256 dividing N (256 feeds the v6e/v7x 256x256 MXU)
        tn = next((t for t in range(256, 7, -8) if N % t == 0), N)
    assert N % tn == 0, (N, tn)
    n_tiles = N // tn

    # glue: conv-as-unfold patch extraction; bf16 halves the biggest DMA stream
    patches = x.reshape(B, C, gh, P, gw, P).transpose(0, 2, 4, 1, 3, 5)
    patches = patches.reshape(B, N, PD).astype(jnp.bfloat16)
    keep = (1.0 - mask.astype(jnp.float32)).reshape(B, N, 1)   # precomputed 1-mask

    # bf16 weights for the MXU matmuls; head weights zero-padded to OUT_pad lanes
    w_patch = params["w_patch"].astype(jnp.bfloat16)
    w_e2d = params["w_e2d"].astype(jnp.bfloat16)
    w_head = jnp.pad(params["w_head"], ((0, 0), (0, OUT_pad - OUT))).astype(jnp.bfloat16)
    b_head = jnp.pad(params["b_head"], ((0, 0), (0, OUT_pad - OUT)))

    vmem_cap = 48 * 1024 * 1024   # explicit scoped limit, headroom under v7x's 64 MiB

    # ---- kernel 1: batch-invariant mask-token half of the decoder ----
    mean_mask, head_mask_b = pl.pallas_call(
        functools.partial(_mask_half_kernel, N),
        out_shape=(jax.ShapeDtypeStruct((1, Ed), jnp.float32),
                   jax.ShapeDtypeStruct((N, OUT_pad), jnp.float32)),
        grid=(n_tiles,),
        in_specs=[
            pl.BlockSpec((tn, Ed), lambda t: (t, 0)),   # pos_embed tile
            _const_spec((1, Ed)),                       # mask_token
            _const_spec((1, Ed)),                       # dec_ln_g
            _const_spec((1, Ed)),                       # dec_ln_b
            _const_spec((Ed, OUT_pad)),                 # w_head (bf16, padded)
            _const_spec((1, OUT_pad)),                  # b_head (padded, folded here)
        ],
        out_specs=(
            pl.BlockSpec((1, Ed), lambda t: (0, 0)),        # mean_mask (accumulator)
            pl.BlockSpec((tn, OUT_pad), lambda t: (t, 0)),  # head_mask + b_head
        ),
        compiler_params=pltpu.CompilerParams(
            dimension_semantics=("arbitrary",), vmem_limit_bytes=vmem_cap),
    )(params["pos_embed"], params["mask_token"], params["dec_ln_g"],
      params["dec_ln_b"], w_head, b_head)

    # ---- kernel 2: fused per-batch, token-tiled encoder/e2d/decoder(vis) ----
    ctx_head = pl.pallas_call(
        functools.partial(_mae_fused_kernel, N),
        out_shape=jax.ShapeDtypeStruct((B, 1, OUT_pad), jnp.float32),
        grid=(B, n_tiles),
        in_specs=[
            pl.BlockSpec((pl.Squeezed(), tn, PD), lambda b, t: (b, t, 0)),  # patches (bf16)
            pl.BlockSpec((pl.Squeezed(), tn, 1), lambda b, t: (b, t, 0)),   # keep = 1-mask
            _const_spec((PD, Ee)),                                          # w_patch (bf16)
            _const_spec((1, Ee)),                                           # b_patch
            _const_spec((1, Ee)),                                           # ln_g
            _const_spec((1, Ee)),                                           # ln_b
            _const_spec((Ee, Ed)),                                          # w_e2d (bf16)
            pl.BlockSpec((tn, Ed), lambda b, t: (t, 0)),                    # pos_embed tile
            _const_spec((1, Ed)),                                           # dec_ln_g
            _const_spec((1, Ed)),                                           # dec_ln_b
            _const_spec((Ed, OUT_pad)),                                     # w_head (bf16)
            _const_spec((1, Ed)),                                           # mean_mask
        ],
        out_specs=pl.BlockSpec((pl.Squeezed(), 1, OUT_pad), lambda b, t: (b, 0, 0)),
        scratch_shapes=[pltpu.VMEM((1, Ed), jnp.float32)],                  # token-mean acc
        compiler_params=pltpu.CompilerParams(
            dimension_semantics=("parallel", "arbitrary"), vmem_limit_bytes=vmem_cap),
    )(patches, keep, w_patch, params["b_patch"], params["ln_g"], params["ln_b"],
      w_e2d, params["pos_embed"], params["dec_ln_g"], params["dec_ln_b"],
      w_head, mean_mask)

    # ---- kernel 3: lane-dense token-tiled epilogue (both axes parallel) ----
    out_pad = pl.pallas_call(
        _epilogue_kernel,
        out_shape=jax.ShapeDtypeStruct((B, N, OUT_pad), jnp.float32),
        grid=(B, n_tiles),
        in_specs=[
            pl.BlockSpec((tn, OUT_pad), lambda b, t: (t, 0)),                   # head_mask+b
            pl.BlockSpec((pl.Squeezed(), 1, OUT_pad), lambda b, t: (b, 0, 0)),  # ctx_head[b]
        ],
        out_specs=pl.BlockSpec((pl.Squeezed(), tn, OUT_pad), lambda b, t: (b, t, 0)),
        compiler_params=pltpu.CompilerParams(
            dimension_semantics=("parallel", "parallel"), vmem_limit_bytes=vmem_cap),
    )(head_mask_b, ctx_head)

    return out_pad[:, :, :OUT]


# -----------------------------------------------------------------------------
# Pure-JAX reference (same math / same bf16 MXU input precision + f32 acc, and
# the same exact-arithmetic head decomposition) for a sanity check.
# -----------------------------------------------------------------------------
def mae_forward_ref(x, mask, params, patch_size):
    B, C, H, W = x.shape
    P = patch_size
    gh, gw = H // P, W // P
    N = gh * gw
    Ed = params["w_e2d"].shape[1]

    patches = x.reshape(B, C, gh, P, gw, P).transpose(0, 2, 4, 1, 3, 5)
    patches = patches.reshape(B, N, C * P * P)
    keep = (1.0 - mask.astype(jnp.float32))[:, :, None]

    def ln(v, g, b, eps=1e-6):
        mu = v.mean(-1, keepdims=True)
        var = ((v - mu) ** 2).mean(-1, keepdims=True)
        return (v - mu) / jnp.sqrt(var + eps) * g + b

    t = jnp.dot(patches.astype(jnp.bfloat16), params["w_patch"].astype(jnp.bfloat16),
                preferred_element_type=jnp.float32) + params["b_patch"]
    x_vis = ln(t, params["ln_g"], params["ln_b"]) * keep

    xd = jnp.dot(x_vis.astype(jnp.bfloat16), params["w_e2d"].astype(jnp.bfloat16),
                 preferred_element_type=jnp.float32)
    pos = params["pos_embed"][None]
    mask_half = jnp.broadcast_to(params["mask_token"][None], (B, N, Ed)) + pos
    x_full = jnp.concatenate([xd + pos, mask_half], axis=1)

    y = ln(x_full, params["dec_ln_g"], params["dec_ln_b"])
    ctx = y.mean(axis=1, keepdims=True)
    w_head_b = params["w_head"].astype(jnp.bfloat16)
    # (y + ctx) @ W + b  ==  y @ W + ctx @ W + b  (same decomposition as the kernels)
    o = (jnp.dot(y[:, N:].astype(jnp.bfloat16), w_head_b,
                 preferred_element_type=jnp.float32)
         + jnp.dot(ctx.astype(jnp.bfloat16), w_head_b,
                   preferred_element_type=jnp.float32)
         + params["b_head"])
    return o


# -----------------------------------------------------------------------------
def make_params(key, C, P, N, Ee, Ed):
    PD = C * P * P
    OUT = C * P * P
    ks = jax.random.split(key, 4)

    def xavier(k, fin, fout):
        lim = math.sqrt(6.0 / (fin + fout))
        return jax.random.uniform(k, (fin, fout), jnp.float32, -lim, lim)

    return dict(
        w_patch=xavier(ks[0], PD, Ee),
        b_patch=jnp.zeros((1, Ee), jnp.float32),
        ln_g=jnp.ones((1, Ee), jnp.float32),
        ln_b=jnp.zeros((1, Ee), jnp.float32),
        w_e2d=xavier(ks[1], Ee, Ed),                       # encoder_to_decoder (no bias)
        mask_token=(0.02 * jax.random.truncated_normal(    # trunc_normal_(std=0.02)
            ks[2], -2.0, 2.0, (1, Ed))).astype(jnp.float32),
        pos_embed=get_sinusoid_encoding_table(N, Ed),
        dec_ln_g=jnp.ones((1, Ed), jnp.float32),
        dec_ln_b=jnp.zeros((1, Ed), jnp.float32),
        w_head=xavier(ks[3], Ed, OUT),
        b_head=jnp.zeros((1, OUT), jnp.float32),
    )


if __name__ == "__main__":
    key = jax.random.PRNGKey(0)
    B, C, H, W, P = 2, 4, 32, 32, 4
    N = (H // P) * (W // P)          # 64 patches -> 4 token tiles of 16
    Ee, Ed = 32, 16                  # encoder_embed_dim, decoder_embed_dim (small)

    k_x, k_m, k_p = jax.random.split(key, 3)
    x = jax.random.normal(k_x, (B, C, H, W), jnp.float32)
    mask = jax.random.bernoulli(k_m, 0.75, (B, N))          # True = masked
    params = make_params(k_p, C, P, N, Ee, Ed)

    # tn=16 exercises the token-tiled accumulator path (4 tiles) at toy size;
    # production sizes use the default tn=256.
    y = mae_forward(x, mask, params, P, tn=16)
    y = jax.block_until_ready(y)

    y_ref = mae_forward_ref(x, mask, params, P)
    assert y.shape == (B, N, C * P * P), y.shape
    err = float(jnp.max(jnp.abs(y - y_ref)))
    assert err < 2e-2, err           # bf16 MXU inputs on the head dots

    print("KERNEL_OK")
</pallas_src>

<mosaic_0001>
module attributes {stable_mosaic.version = 11 : i64} {
  func.func @_mask_half_kernel(%arg0: i32, %arg1: memref<16x16xf32, #tpu.memory_space<vmem>>, %arg2: memref<1x16xf32, #tpu.memory_space<vmem>>, %arg3: memref<1x16xf32, #tpu.memory_space<vmem>>, %arg4: memref<1x16xf32, #tpu.memory_space<vmem>>, %arg5: memref<16x128xbf16, #tpu.memory_space<vmem>>, %arg6: memref<1x128xf32, #tpu.memory_space<vmem>>, %arg7: memref<1x16xf32, #tpu.memory_space<vmem>>, %arg8: memref<16x128xf32, #tpu.memory_space<vmem>>) attributes {dimension_semantics = [#tpu.dimension_semantics<arbitrary>], iteration_bounds = array<i64: 4>, scalar_prefetch = 0 : i64, scratch_operands = 0 : i64, tpu.core_type = #tpu.core_type<tc>, window_params = [{transform_indices = @transform_0, window_bounds = array<i64: 16, 16>}, {pipeline_mode = #tpu.pipeline_mode<synchronous>, transform_indices = @transform_1, window_bounds = array<i64: 1, 16>}, {pipeline_mode = #tpu.pipeline_mode<synchronous>, transform_indices = @transform_2, window_bounds = array<i64: 1, 16>}, {pipeline_mode = #tpu.pipeline_mode<synchronous>, transform_indices = @transform_3, window_bounds = array<i64: 1, 16>}, {pipeline_mode = #tpu.pipeline_mode<synchronous>, transform_indices = @transform_4, window_bounds = array<i64: 16, 128>}, {pipeline_mode = #tpu.pipeline_mode<synchronous>, transform_indices = @transform_5, window_bounds = array<i64: 1, 128>}, {pipeline_mode = #tpu.pipeline_mode<synchronous>, transform_indices = @transform_6, window_bounds = array<i64: 1, 16>}, {transform_indices = @transform_7, window_bounds = array<i64: 16, 128>}]} {
    %c0_i32 = arith.constant 0 : i32
    %0 = arith.cmpi eq, %arg0, %c0_i32 : i32
    %1 = arith.extui %0 : i1 to i32
    %c0_i32_0 = arith.constant 0 : i32
    %2 = arith.cmpi ne, %1, %c0_i32_0 : i32
    scf.if %2 {
      %cst_25 = arith.constant 0.000000e+00 : f32
      %46 = vector.broadcast %cst_25 : f32 to vector<1x16xf32>
      %c0_26 = arith.constant 0 : index
      %c0_27 = arith.constant 0 : index
      %47 = vector.load %arg7[%c0_26, %c0_27] : memref<1x16xf32, #tpu.memory_space<vmem>>, vector<1x16xf32>
      tpu.vector_store %arg7[%c0_26, %c0_27], %46 {strides = array<i32>} : memref<1x16xf32, #tpu.memory_space<vmem>>, vector<1x16xf32>,
    } else {
    }
    %c0 = arith.constant 0 : index
    %c0_1 = arith.constant 0 : index
    %3 = vector.load %arg2[%c0, %c0_1] : memref<1x16xf32, #tpu.memory_space<vmem>>, vector<1x16xf32>
    %c0_2 = arith.constant 0 : index
    %c0_3 = arith.constant 0 : index
    %4 = vector.load %arg1[%c0_2, %c0_3] : memref<16x16xf32, #tpu.memory_space<vmem>>, vector<16x16xf32>
    %5 = vector.broadcast %3 : vector<1x16xf32> to vector<16x16xf32>
    %6 = arith.addf %5, %4 : vector<16x16xf32>
    %c0_4 = arith.constant 0 : index
    %c0_5 = arith.constant 0 : index
    %7 = vector.load %arg3[%c0_4, %c0_5] : memref<1x16xf32, #tpu.memory_space<vmem>>, vector<1x16xf32>
    %c0_6 = arith.constant 0 : index
    %c0_7 = arith.constant 0 : index
    %8 = vector.load %arg4[%c0_6, %c0_7] : memref<1x16xf32, #tpu.memory_space<vmem>>, vector<1x16xf32>
    %cst = arith.constant dense<0.000000e+00> : vector<16xf32>
    %9 = vector.multi_reduction <add>, %6, %cst [1] : vector<16x16xf32> to vector<16xf32>
    %10 = vector.shape_cast %9 : vector<16xf32> to vector<16x1xf32>
    %cst_8 = arith.constant 1.600000e+01 : f32
    %11 = vector.broadcast %cst_8 : f32 to vector<16x1xf32>
    %12 = arith.divf %10, %11 : vector<16x1xf32>
    %13 = arith.mulf %6, %6 : vector<16x16xf32>
    %cst_9 = arith.constant dense<0.000000e+00> : vector<16xf32>
    %14 = vector.multi_reduction <add>, %13, %cst_9 [1] : vector<16x16xf32> to vector<16xf32>
    %15 = vector.shape_cast %14 : vector<16xf32> to vector<16x1xf32>
    %cst_10 = arith.constant 1.600000e+01 : f32
    %16 = vector.broadcast %cst_10 : f32 to vector<16x1xf32>
    %17 = arith.divf %15, %16 : vector<16x1xf32>
    %18 = vector.broadcast %12 : vector<16x1xf32> to vector<16x16xf32>
    %19 = arith.subf %6, %18 : vector<16x16xf32>
    %20 = arith.mulf %12, %12 : vector<16x1xf32>
    %21 = arith.subf %17, %20 : vector<16x1xf32>
    %cst_11 = arith.constant 9.99999997E-7 : f32
    %22 = vector.broadcast %cst_11 : f32 to vector<16x1xf32>
    %23 = arith.addf %21, %22 : vector<16x1xf32>
    %24 = math.rsqrt %23 : vector<16x1xf32>
    %25 = vector.broadcast %24 : vector<16x1xf32> to vector<16x16xf32>
    %26 = arith.mulf %19, %25 : vector<16x16xf32>
    %27 = vector.broadcast %7 : vector<1x16xf32> to vector<16x16xf32>
    %28 = arith.mulf %26, %27 : vector<16x16xf32>
    %29 = vector.broadcast %8 : vector<1x16xf32> to vector<16x16xf32>
    %30 = arith.addf %28, %29 : vector<16x16xf32>
    %c0_12 = arith.constant 0 : index
    %c0_13 = arith.constant 0 : index
    %31 = vector.load %arg7[%c0_12, %c0_13] : memref<1x16xf32, #tpu.memory_space<vmem>>, vector<1x16xf32>
    %cst_14 = arith.constant dense<0.000000e+00> : vector<16xf32>
    %32 = vector.multi_reduction <add>, %30, %cst_14 [0] : vector<16x16xf32> to vector<16xf32>
    %33 = vector.shape_cast %32 : vector<16xf32> to vector<1x16xf32>
    %34 = arith.addf %31, %33 : vector<1x16xf32>
    %c0_15 = arith.constant 0 : index
    %c0_16 = arith.constant 0 : index
    %35 = vector.load %arg7[%c0_15, %c0_16] : memref<1x16xf32, #tpu.memory_space<vmem>>, vector<1x16xf32>
    tpu.vector_store %arg7[%c0_15, %c0_16], %34 {strides = array<i32>} : memref<1x16xf32, #tpu.memory_space<vmem>>, vector<1x16xf32>,
    %36 = arith.truncf %30 : vector<16x16xf32> to vector<16x16xbf16>
    %c0_17 = arith.constant 0 : index
    %c0_18 = arith.constant 0 : index
    %37 = vector.load %arg5[%c0_17, %c0_18] : memref<16x128xbf16, #tpu.memory_space<vmem>>, vector<16x128xbf16>
    %cst_19 = arith.constant dense<0.000000e+00> : vector<16x128xf32>
    %38 = tpu.matmul %36, %37, %cst_19 {dimension_numbers = #tpu.dot_dimension_numbers<[1], [0], [0], [1], [0, 0, 1, 1], [], []>} : vector<16x16xbf16>, vector<16x128xbf16>, vector<16x128xf32> -> vector<16x128xf32>
    %c0_20 = arith.constant 0 : index
    %c0_21 = arith.constant 0 : index
    %39 = vector.load %arg6[%c0_20, %c0_21] : memref<1x128xf32, #tpu.memory_space<vmem>>, vector<1x128xf32>
    %40 = vector.broadcast %39 : vector<1x128xf32> to vector<16x128xf32>
    %41 = arith.addf %38, %40 : vector<16x128xf32>
    %c0_22 = arith.constant 0 : index
    %c0_23 = arith.constant 0 : index
    %42 = vector.load %arg8[%c0_22, %c0_23] : memref<16x128xf32, #tpu.memory_space<vmem>>, vector<16x128xf32>
    tpu.vector_store %arg8[%c0_22, %c0_23], %41 {strides = array<i32>} : memref<16x128xf32, #tpu.memory_space<vmem>>, vector<16x128xf32>,
    %c3_i32 = arith.constant 3 : i32
    %43 = arith.cmpi eq, %arg0, %c3_i32 : i32
    %44 = arith.extui %43 : i1 to i32
    %c0_i32_24 = arith.constant 0 : i32
    %45 = arith.cmpi ne, %44, %c0_i32_24 : i32
    scf.if %45 {
      %c0_25 = arith.constant 0 : index
      %c0_26 = arith.constant 0 : index
      %46 = vector.load %arg7[%c0_25, %c0_26] : memref<1x16xf32, #tpu.memory_space<vmem>>, vector<1x16xf32>
      %cst_27 = arith.constant 1.562500e-02 : f32
      %47 = vector.broadcast %cst_27 : f32 to vector<1x16xf32>
      %48 = arith.mulf %46, %47 : vector<1x16xf32>
      %c0_28 = arith.constant 0 : index
      %c0_29 = arith.constant 0 : index
      %49 = vector.load %arg7[%c0_28, %c0_29] : memref<1x16xf32, #tpu.memory_space<vmem>>, vector<1x16xf32>
      tpu.vector_store %arg7[%c0_28, %c0_29], %48 {strides = array<i32>} : memref<1x16xf32, #tpu.memory_space<vmem>>, vector<1x16xf32>,
    } else {
    }
    return
  }
  func.func @transform_0(%arg0: i32) -> (i32, i32) {
    %c0_i32 = arith.constant 0 : i32
    %c0_i32_0 = arith.constant 0 : i32
    return %arg0, %c0_i32 : i32, i32
  }
  func.func @transform_1(%arg0: i32) -> (i32, i32) {
    %c0_i32 = arith.constant 0 : i32
    %c0_i32_0 = arith.constant 0 : i32
    %c0_i32_1 = arith.constant 0 : i32
    return %c0_i32, %c0_i32_0 : i32, i32
  }
  func.func @transform_2(%arg0: i32) -> (i32, i32) {
    %c0_i32 = arith.constant 0 : i32
    %c0_i32_0 = arith.constant 0 : i32
    %c0_i32_1 = arith.constant 0 : i32
    return %c0_i32, %c0_i32_0 : i32, i32
  }
  func.func @transform_3(%arg0: i32) -> (i32, i32) {
    %c0_i32 = arith.constant 0 : i32
    %c0_i32_0 = arith.constant 0 : i32
    %c0_i32_1 = arith.constant 0 : i32
    return %c0_i32, %c0_i32_0 : i32, i32
  }
  func.func @transform_4(%arg0: i32) -> (i32, i32) {
    %c0_i32 = arith.constant 0 : i32
    %c0_i32_0 = arith.constant 0 : i32
    %c0_i32_1 = arith.constant 0 : i32
    return %c0_i32, %c0_i32_0 : i32, i32
  }
  func.func @transform_5(%arg0: i32) -> (i32, i32) {
    %c0_i32 = arith.constant 0 : i32
    %c0_i32_0 = arith.constant 0 : i32
    %c0_i32_1 = arith.constant 0 : i32
    return %c0_i32, %c0_i32_0 : i32, i32
  }
  func.func @transform_6(%arg0: i32) -> (i32, i32) {
    %c0_i32 = arith.constant 0 : i32
    %c0_i32_0 = arith.constant 0 : i32
    %c0_i32_1 = arith.constant 0 : i32
    return %c0_i32, %c0_i32_0 : i32, i32
  }
  func.func @transform_7(%arg0: i32) -> (i32, i32) {
    %c0_i32 = arith.constant 0 : i32
    %c0_i32_0 = arith.constant 0 : i32
    return %arg0, %c0_i32 : i32, i32
  }
}

</mosaic_0001>

<bundles_post_ra>
// kernel: tpu_custom_call.1
= control target key start
LH: loop header
LB: loop body
LE: loop exit
PB: predicated region body
PF: predicated region fallthrough
CT: control target
= control target key end

     0   :  { %13 = vsyncpa [#allocation3], 0  ;;  %s918_s0 = inlined_call_operand.vmem [shape: f32[64,16], index: 0, kind: input, shape index: {}]   ;;  %s919_s1 = inlined_call_operand.vmem [shape: f32[1,16], index: 1, kind: input, shape index: {}]   ;;  %s920_s2 = inlined_call_operand.vmem [shape: f32[1,16], index: 2, kind: input, shape index: {}]   ;;  %s921_s3 = inlined_call_operand.vmem [shape: f32[1,16], index: 3, kind: input, shape index: {}]   ;;  %s922_s4 = inlined_call_operand.vmem [shape: bf16[16,128], index: 4, kind: input, shape index: {}]   ;;  %s923_s5 = inlined_call_operand.vmem [shape: f32[1,128], index: 5, kind: input, shape index: {}]   ;;  %s924_s6 = inlined_call_operand.hbm [shape: f32[1,16], index: 6, kind: output, shape index: {0}]   ;;  %s925_s7 = inlined_call_operand.hbm [shape: f32[64,128], index: 7, kind: output, shape index: {1}]  }
   0x1   :  { %14 = vsyncpa [#allocation5], 0 }
   0x2   :  { %16 = vsyncpa [#allocation5 + $0x1], 0  ;;  %s757_s24 = smov 0   ;;  %s759_s25 = smov 0  }
   0x3   :  { %s761_s26 = smov 0   ;;  %s763_s27 = smov 0  }
   0x4 LB: > { %s778_s28 = sadd.s32 4294967295, %s708_s27   ;;  %s529_s29 = sadd.s32 4294967294, %s708_s27   ;;  %s708_s27 = sphi %s763_s27, %s931_s27   ;;  %s704_s26 = sphi %s761_s26, %s930_s26   ;;  %s700_s25 = sphi %s759_s25, %s929_s25   ;;  %s696_s24 = sphi %s757_s24, %s928_s24  }
   0x5   : > { %s782_s30 = sadd.s32 1, %s708_s27   ;;  %s181_s8 = sadd.s32 1, %s704_s26 }
   0x6   : > { %s178_s9 = ssub.s32 %s708_s27, %s782_s30  ;;  %p191_p0 = scmp.ne.s32.totalorder %s704_s26, %s700_s25 }
   0x7   : > { %p179_p1 = scmp.eq.s32.totalorder %s178_s9, 0  ;;  %p192_p2 = scmp.eq.s32.totalorder %s778_s28, 3 }
   0x8   : > { %p197_p3 = scmp.ne.s32.totalorder %s700_s25, %s696_s24  ;;  %p198_p4 = scmp.eq.s32.totalorder %s529_s29, 3 }
   0x9   : > { %s793_s10 = scalar_select %p179_p1, %s704_s26, %s181_s8  }
   0xa   : > { %p797_p5 = por %p192_p2, %p191_p0  ;;  %p801_p6 = por %p198_p4, %p197_p3 }
   0xb   : > { %p532_p7 = scmp.ge.s32.totalorder %s708_s27, 1  ;;  %p240_p8 = scmp.lt.s32.totalorder %s708_s27, 5 }
   0xd   : > { %p241_p9 = pnand %p532_p7, %p240_p8 }
   0xe   : > { %s269_s13 = sand.u32 (!%p241_p9), 1, %s700_s25   ;;  %s534_s14 = sshll.u32 (!%p241_p9), %s778_s28, 1 }
   0xf   : > { %244 = sbr.rel (%p241_p9) target bundleno = 473 (0x1d9), region = 44  ;;  %s533_s15 = sshll.u32 (!%p241_p9), %s269_s13, 4 }
  0x10   : > { %p273_p10 = scmp.lt.s32.totalorder (!%p241_p9), %s534_s14, 7  ;;  %s814_s20 = scalar_lea.vmem (!%p241_p9), [#allocation4], %s533_s15 }
  0x11   : > { %p536_p11 = scmp.ne.s32.totalorder (!%p241_p9), %s778_s28, 0 }
  0x16   : > { %s933_s14 = smov (!%p273_p10, %s534_s14), 7  ;;  %283 = sbr.rel (%p536_p11) target bundleno = 29 (0x1d), region = 48 }
  0x17   : > { %s535_s16 = sshll.u32 %s933_s14, 3  ;;  %vm284_vm0 = vcmask (!%p536_p11), 122880   ;;  %v710_v0 = vmov (!%p536_p11), 0.0  }
  0x18   : > { %s276_s19 = scalar_lea.vmem %s918_s0, %s535_s16  ;;  %285 = vst.msk [vmem:[#allocation2] sm:$0x1] (!%p536_p11), %vm284_vm0, %v710_v0 }
  0x1d PF: > { %v537_v1 = vld [vmem:[%s919_s1] ss:$0 sm:$0xff]  ;;  %vm299_vm1 = vcmask 130048   ;;  %v288_v3 = vld [vmem:[%s276_s19 + $0x8] sm:$0xff]  ;;  %v711_v13 = vmov 0.0   ;;  %vm712_vm2 = vmmov 0  }
  0x1e   : > { %v287_v2 = vld [vmem:[%s276_s19] sm:$0xff]  ;;  %v296_v5 = vadd.f32 %v537_v1, %v288_v3  ;;  %554 = vmatprep.subr.bf16.mxu0 %v711_v13  ;;  %556 = vmatprep.mubr.msk.bf16.mxu0 %vm712_vm2, %v711_v13  ;;  %vm358_vm3 = vcmask 122880   ;;  %p543_p12 = scmp.ne.s32.totalorder %s778_s28, 3 }
  0x1f   : > { %v295_v4 = vadd.f32 %v537_v1, %v287_v2  ;;  %v611_v12 = vld [vmem:[%s922_s4] sm:$0xff]  }
  0x20   : > { %v310_v8 = vmul.f32 %v296_v5, %v296_v5  ;;  %v303_v10 = vsel %vm299_vm1, %v296_v5, 0.0  ;;  %555 = vmatpush3.bf16.msra.mxu0 %v611_v12  ;;  %v538_v30 = vld [vmem:[%s920_s2] ss:$0 sm:$0xff] }
  0x21   : > { %v300_v6 = vsel %vm299_vm1, %v295_v4, 0.0  ;;  %v309_v7 = vmul.f32 %v295_v4, %v295_v4  ;;  %v539_v35 = vld [vmem:[%s921_s3] ss:$0 sm:$0xff] }
  0x22   : > { %301 = vadd.xlane.f32.xlu0 %v300_v6  ;;  %v314_v11 = vsel %vm299_vm1, %v310_v8, 0.0  ;;  %v347_v49 = vld [vmem:[#allocation2] sm:$0x1] }
  0x23   : > { %v311_v9 = vsel %vm299_vm1, %v309_v7, 0.0  ;;  %v540_v52 = vld [vmem:[%s923_s5] ss:$0 sm:$0xff] }
  0x24   : > { %312 = vadd.xlane.f32.xlu1 %v311_v9 }
  0x26   : > { %304 = vadd.xlane.f32.xlu0 %v303_v10 }
  0x28   : > { %315 = vadd.xlane.f32.xlu1 %v314_v11 }
  0xaf   : > { %v302_v14 = vpop.xlane.xlu0 %301 }
  0xb0   : > { %v307_v15 = vmul.f32 0.0625, %v302_v14 }
  0xb1   : > { %v313_v16 = vpop.xlane.xlu1 %312 }
  0xb2   : > { %v321_v17 = vmul.f32 %v307_v15, %v307_v15  ;;  %v317_v18 = vmul.f32 0.0625, %v313_v16  ;;  %v319_v28 = vsub.f32 %v295_v4, %v307_v15 }
  0xb3   : > { %v305_v19 = vpop.xlane.xlu0 %304 }
  0xb4   : > { %v323_v20 = vsub.f32 %v317_v18, %v321_v17  ;;  %v308_v21 = vmul.f32 0.0625, %v305_v19 }
  0xb5   : > { %v316_v22 = vpop.xlane.xlu1 %315 }
  0xb6   : > { %v325_v23 = vadd.f32 1e-06, %v323_v20  ;;  %v322_v24 = vmul.f32 %v308_v21, %v308_v21  ;;  %v318_v25 = vmul.f32 0.0625, %v316_v22  ;;  %v320_v32 = vsub.f32 %v296_v5, %v308_v21 }
  0xb8   : > { %612 = vrsqrt.f32 %v325_v23  ;;  %v324_v26 = vsub.f32 %v318_v25, %v322_v24 }
  0xba   : > { %v326_v27 = vadd.f32 1e-06, %v324_v26 }
  0xbc   : > { %614 = vrsqrt.f32 %v326_v27 }
  0xc2   : > { %v613_v29 = vpop.eup %612 }
  0xc3   : > { %v329_v31 = vmul.f32 %v613_v29, %v319_v28 }
  0xc5   : > { %v337_v33 = vmul.f32 %v538_v30, %v329_v31 }
  0xc6   : > { %v615_v34 = vpop.eup %614 }
  0xc7   : > { %v330_v36 = vmul.f32 %v615_v34, %v320_v32  ;;  %v345_v38 = vadd.f32 %v539_v35, %v337_v33 }
  0xc9   : > { %v338_v37 = vmul.f32 %v538_v30, %v330_v36  ;;  %v348_v40 = vsel %vm299_vm1, %v345_v38, 0.0 }
  0xcb   : > { %v346_v39 = vadd.f32 %v539_v35, %v338_v37 }
  0xcd   : > { %v349_v41 = vsel %vm299_vm1, %v346_v39, 0.0  ;;  %v360_v42 = vpack.c.bf16 %v346_v39, %v345_v38 }
  0xce   : > { %v350_v43 = vadd.f32 %v349_v41, %v348_v40 }
  0xcf   : > { %557 = vmatmul.mubr.msk.bf16.vlgmr.msra.gmra.mrb[0].mxu0 %vm299_vm1, %v360_v42 }
  0xd0   : > { %v351_v44 = vrot.slane %v350_v43, 4 }
  0xd2   : > { %v352_v45 = vadd.f32 %v351_v44, %v350_v43 }
  0xd4   : > { %v353_v46 = vrot.slane %v352_v45, 2 }
  0xd6   : > { %v354_v47 = vadd.f32 %v353_v46, %v352_v45 }
  0xd8   : > { %v355_v48 = vrot.slane %v354_v47, 1 }
  0xda   : > { %v356_v50 = vadd.f32 %v355_v48, %v354_v47 }
  0xdc   : > { %v357_v51 = vadd.f32 %v356_v50, %v347_v49 }
  0xde   : > { %359 = vst.msk [vmem:[#allocation2] sm:$0x1] %vm358_vm3, %v357_v51 }
  0xe5   : > { %v426_v59 = vld [vmem:[#allocation2] sm:$0x1] (!%p543_p12) }
  0xe6   : > { %v427_v60 = vmul.f32 (!%p543_p12), 0.015625, %v426_v59 }
  0xe8   : > { %428 = vst.msk [vmem:[#allocation2] sm:$0x1] (!%p543_p12), %vm358_vm3, %v427_v60 }
 0x1a1   : > { %425 = sbr.rel (%p543_p12) target bundleno = 424 (0x1a8), region = 52 }
 0x1a2   : > { %v413_v53 = vpop.f32.mrb[0].mxu0 }
 0x1a3   : > { %v414_v54 = vadd.f32 %v540_v52, %v413_v53  ;;  %v558_v55 = vpop.f32.mrb[1].mxu0 }
 0x1a4   : > { %v416_v56 = vpop.f32.mrb[2].mxu0 }
 0x1a5   : > { %420 = vst [vmem:[%s814_s20] sm:$0xff] %v414_v54  ;;  %v417_v57 = vadd.f32 %v540_v52, %v416_v56  ;;  %v559_v58 = vpop.f32.mrb[3].mxu0 }
 0x1a7   : > { %421 = vst [vmem:[%s814_s20 + $0x8] sm:$0xff] %v417_v57 }
 0x1a8 PF: > { %s713_s18 = smov [#allocation2]   ;;  %s551_s21 = sshll.u32 %s778_s28, 8 }
 0x1a9   : > { %s441_s19 = sshll.u32 %s713_s18, 4  ;;  %s848_s29 = scalar_lea.hbm %s925_s7, %s551_s21  ;;  %s442_s19 = int_to_ptr.vmem [resolvable:$true] %s441_s19 }
 0x1aa   : > { %s616_s8 = scalar_lea.vmem %s442_s19, 16  ;;  %s622_s9 = scalar_lea.vmem %s442_s19, 32 }
 0x1ab   : > { %p617_p13 = scmp.ne.s32.totalorder %s442_s19, %s616_s8  ;;  %p623_p3 = scmp.lt.s32.totalorder %s442_s19, %s442_s19 }
 0x1ac   : > { %p624_p4 = scmp.lt.s32.totalorder %s622_s9, %s616_s8 }
 0x1ad   : > { %p618_p0 = pnand %p617_p13, %p192_p2 }
 0x1ae   : > { %p625_p7 = por %p624_p4, %p623_p3 }
 0x1af   : > { %p619_p1 = pneg %p618_p0 }
 0x1b1   : > { %p626_p8 = pnand %p625_p7, %p619_p1 }
 0x1b3   : > { %629 = shalt.err (!%p626_p8)
}
 0x1b4   : > { %s630_s16 = scalar_lea.hbm %s924_s6, 16 }
 0x1b5   : > { %p631_p9 = scmp.ne.s32.totalorder %s924_s6, %s630_s16  ;;  %p636_p12 = scmp.lt.u32.totalorder %s630_s16, %s924_s6 }
 0x1b7   : > { %p632_p10 = pnand %p631_p9, %p192_p2 }
 0x1b9   : > { %p633_p11 = pneg %p632_p10 }
 0x1bb   : > { %p638_p13 = pnand %p636_p12, %p633_p11 }
 0x1bd   : > { %641 = shalt.err (!%p638_p13)
}
 0x1be   : > { %561 = dma.vmem_to_hbm [thread:$0]  (%p192_p2), %s442_s19, 16, %s924_s6, [#allocation3]  }
 0x1bf   : > { %s454_s9 = sshll.u32 %s814_s20, 4  ;;  %s873_s14 = scalar_lea.sflag [#allocation5], %s269_s13  ;;  %s869_s9 = int_to_ptr.vmem [resolvable:$true] %s454_s9 }
 0x1c0   : > { %s642_s15 = scalar_lea.vmem %s869_s9, 256  ;;  %s714_s16 = smov [#allocation4]  }
 0x1c1   : > { %p643_p0 = scmp.ne.s32.totalorder %s869_s9, %s642_s15  ;;  %s646_s17 = sshll.u32 %s714_s16, 4  ;;  %s647_s17 = int_to_ptr.vmem [resolvable:$false] %s646_s17 }
 0x1c2   : > { %s648_s18 = scalar_lea.vmem %s647_s17, 512  ;;  %p649_p4 = scmp.lt.s32.totalorder %s869_s9, %s647_s17 }
 0x1c3   : > { %p644_p1 = pnand %p643_p0, %p797_p5  ;;  %p650_p7 = scmp.lt.s32.totalorder %s648_s18, %s642_s15 }
 0x1c5   : > { %p645_p3 = pneg %p644_p1  ;;  %p651_p8 = por %p650_p7, %p649_p4 }
 0x1c7   : > { %p652_p9 = pnand %p651_p8, %p645_p3 }
 0x1c9   : > { %655 = shalt.err (!%p652_p9)
}
 0x1ca   : > { %s656_s13 = scalar_lea.hbm %s848_s29, 256  ;;  %s660_s21 = scalar_lea.hbm %s925_s7, 1024 }
 0x1cb   : > { %p657_p10 = scmp.ne.s32.totalorder %s848_s29, %s656_s13  ;;  %p661_p13 = scmp.lt.u32.totalorder %s848_s29, %s925_s7 }
 0x1cc   : > { %p662_p0 = scmp.lt.u32.totalorder %s660_s21, %s656_s13  ;;  %p664_p3 = scmp.lt.u32.totalorder %s656_s13, %s848_s29 }
 0x1cd   : > { %p658_p11 = pnand %p657_p10, %p797_p5 }
 0x1ce   : > { %p663_p1 = por %p662_p0, %p661_p13 }
 0x1cf   : > { %p659_p12 = pneg %p658_p11 }
 0x1d0   : > { %p665_p4 = por %p664_p3, %p663_p1 }
 0x1d2   : > { %p666_p7 = pnand %p665_p4, %p659_p12 }
 0x1d4   : > { %669 = shalt.err (!%p666_p7)
}
 0x1d5   : > { %s715_s8 = smov 128   ;;  %s716_s15 = smov 8  }
 0x1d6   : > { %562 = dma.vmem_to_hbm [thread:$0]  (%p797_p5), %s869_s9, 256, %s848_s29, %s873_s14, %s715_s8, %s715_s8, %s716_s15  }
 0x1d7   : > { %687 = dma.done.wait (%p192_p2), [#allocation3], 16  }
 0x1d8   : > { %689 = vsyncadd (%p192_p2), [#allocation3], 4294967280 }
 0x1d9 PF: > { %p572_p8 = scmp.ge.s32.totalorder %s708_s27, 2  ;;  %s473_s16 = sand.u32 1, %s696_s24  }
 0x1da   : > { %s474_s17 = scalar_lea.sflag [#allocation5], %s473_s16 }
 0x1db   : > { %p567_p9 = pnand %p572_p8, %p801_p6 }
 0x1dd   : > { %691 = dma.done.wait (!%p567_p9), %s474_s17, 256  }
 0x1de   : > { %693 = vsyncadd (!%p567_p9), %s474_s17, 4294967040  ;;  %p19_p5 = scmp.ge.s32.totalorder %s782_s30, 6   ;;  %s928_s24 = smov %s700_s25 }
 0x1df   : > { %s929_s25 = smov %s704_s26  ;;  %s930_s26 = smov %s793_s10 }
 0x1e0   : > { %s931_s27 = smov %s782_s30  ;;  %21 = sbr.rel (!%p19_p5) target bundleno = 4 (0x4), region = 96 }
 0x1e7   :  { %479 = vsyncpa [#allocation3], 1 }
 0x1e8   :  { %481 = vsyncpa [#allocation3 + $0x1], 1 }
 0x1e9   :  { %482 = vsyncpa [#allocation5], 1 }
 0x1ea   :  { %484 = vsyncpa [#allocation5 + $0x1], 1 }

</bundles_post_ra>
